<compile_context>
chip_gen: v7x
topology: tpu7x:2x2x1
jax: 0.10.0
libtpu: 0.0.40
codegen_flags: <defaults>
</compile_context>

<pallas_src>
import functools

import jax
import jax.numpy as jnp
from jax.experimental import pallas as pl
from jax.experimental.pallas import tpu as pltpu


def _mlp_mean_kernel(x_ref, w1_ref, b1_ref, w2r_ref, out_ref, *, inv_n):
    # x_ref  : (tb, D)  bf16  VMEM (row tile of the batch, pipelined)
    # w1_ref : (D, I)   bf16  VMEM (resident across the grid)
    # b1_ref : (1, I)   f32   VMEM (resident)
    # w2r_ref: (1, I)   f32   VMEM (rowsum of W2, resident)
    # out_ref: (1, 1)   f32   VMEM (resident scalar accumulator; written back once at the end)
    i = pl.program_id(0)

    @pl.when(i == 0)
    def _init():
        out_ref[...] = jnp.zeros_like(out_ref)

    # dense_1 + bias + ReLU : bf16 operands, f32 MXU accumulation.
    h = jnp.dot(x_ref[...], w1_ref[...], preferred_element_type=jnp.float32)
    h = jnp.maximum(h + b1_ref[...], 0.0)

    # dense_2 + global mean, collapsed: mean(h @ W2) == sum(h * rowsum(W2)) * (1 / (B*D)).
    # (VPU multiply + XLU reduce; the second MXU pass / second weight load is eliminated.)
    out_ref[...] += jnp.sum(h * w2r_ref[...]) * inv_n


def top_forward(x, w1, b1, w2, *, compute_dtype=jnp.bfloat16):
    """x: [B, D]; w1: [D, I]; b1: [I]; w2: [I, D]  -> scalar f32 (== mean(MLP(x)))."""
    B, D = x.shape
    I = w1.shape[1]
    assert w1.shape == (D, I) and b1.shape == (I,) and w2.shape == (I, D)

    # Exact algebraic collapse of the second (bias-free) linear layer; keep it in f32.
    w2_rowsum = jnp.sum(w2.astype(jnp.float32), axis=1).reshape(1, I)

    # Row tiling: whole batch if small, otherwise 256-row tiles (multiple of the bf16
    # sublane pack of 16; keeps the MXU fed and lets BlockSpec pipeline the x DMA).
    if B > 256 and B % 256 == 0:
        tb = 256
    else:
        tb = B
    num_tiles = B // tb

    xc = x.astype(compute_dtype)
    w1c = w1.astype(compute_dtype)
    b1c = b1.reshape(1, I).astype(jnp.float32)

    inv_n = 1.0 / float(B * D)  # compile-time constant; folded into the accumulate.

    flops = 2 * B * D * I + 3 * B * I  # matmul + (bias, relu, rowsum-dot)
    bytes_accessed = int(
        xc.size * xc.dtype.itemsize
        + w1c.size * w1c.dtype.itemsize
        + b1c.size * b1c.dtype.itemsize
        + w2_rowsum.size * w2_rowsum.dtype.itemsize
        + 4
    )

    # NOTE: everything here is trivially VMEM-resident (<< 32 MiB scoped limit). If D/I grow,
    # re-derive tiling against v7x's 64 MiB VMEM (K-tiled f32 accumulator, "arbitrary" K axis).
    out = pl.pallas_call(
        functools.partial(_mlp_mean_kernel, inv_n=inv_n),
        out_shape=jax.ShapeDtypeStruct((1, 1), jnp.float32),
        grid_spec=pltpu.PrefetchScalarGridSpec(
            num_scalar_prefetch=0,
            grid=(num_tiles,),
            in_specs=[
                pl.BlockSpec((tb, D), lambda i: (i, 0)),  # x row tile (pipelined)
                pl.BlockSpec((D, I), lambda i: (0, 0)),   # W1 (resident)
                pl.BlockSpec((1, I), lambda i: (0, 0)),   # b1 (resident)
                pl.BlockSpec((1, I), lambda i: (0, 0)),   # rowsum(W2) (resident)
            ],
            out_specs=pl.BlockSpec((1, 1), lambda i: (0, 0)),  # resident scalar accumulator
        ),
        compiler_params=pltpu.CompilerParams(
            # Row-tile axis is a reduction into the shared scalar accumulator.
            # (For v7x megacore, emit per-tile partial sums instead and mark it "parallel".)
            dimension_semantics=("arbitrary",),
        ),
        cost_estimate=pl.CostEstimate(
            flops=flops, transcendentals=0, bytes_accessed=bytes_accessed
        ),
    )(xc, w1c, b1c, w2_rowsum)
    return out[0, 0]


if __name__ == "__main__":
    # Small shapes consistent with the module: Linear(D -> 2D) -> ReLU -> Linear(2D -> D) -> mean
    B, D = 8, 128
    I = 2 * D  # intermediate_dim = dim * 2

    key = jax.random.PRNGKey(0)
    kx, k1, kb, k2 = jax.random.split(key, 4)

    x = jax.random.normal(kx, (B, D), dtype=jnp.float32)
    # Deterministic parameter init (PyTorch-Linear-like uniform scale), stored [in, out].
    bound1 = 1.0 / jnp.sqrt(D)
    bound2 = 1.0 / jnp.sqrt(I)
    w1 = jax.random.uniform(k1, (D, I), minval=-bound1, maxval=bound1, dtype=jnp.float32)
    b1 = jax.random.uniform(kb, (I,), minval=-bound1, maxval=bound1, dtype=jnp.float32)
    w2 = jax.random.uniform(k2, (I, D), minval=-bound2, maxval=bound2, dtype=jnp.float32)

    result = jax.block_until_ready(jax.jit(top_forward)(x, w1, b1, w2))

    # Reference 1: same-precision reference (bf16 operands, f32 accumulate, rowsum collapse).
    h_bf = jnp.dot(
        x.astype(jnp.bfloat16), w1.astype(jnp.bfloat16), preferred_element_type=jnp.float32
    )
    h_bf = jnp.maximum(h_bf + b1[None, :], 0.0)
    ref_bf16 = jnp.sum(h_bf * jnp.sum(w2, axis=1)[None, :]) / (B * D)
    assert jnp.allclose(result, ref_bf16, rtol=2e-3, atol=1e-4), (result, ref_bf16)

    # Reference 2: original-module f32 semantics (looser tolerance due to bf16 inputs).
    ref_f32 = jnp.mean(jnp.maximum(x @ w1 + b1, 0.0) @ w2)
    assert jnp.allclose(result, ref_f32, rtol=5e-2, atol=5e-3), (result, ref_f32)

    print("KERNEL_OK")
</pallas_src>

<mosaic_0001>
module attributes {stable_mosaic.version = 11 : i64} {
  func.func @_mlp_mean_kernel(%arg0: i32, %arg1: memref<8x128xbf16, #tpu.memory_space<vmem>>, %arg2: memref<128x256xbf16, #tpu.memory_space<vmem>>, %arg3: memref<1x256xf32, #tpu.memory_space<vmem>>, %arg4: memref<1x256xf32, #tpu.memory_space<vmem>>, %arg5: memref<1x1xf32, #tpu.memory_space<vmem>>) attributes {dimension_semantics = [#tpu.dimension_semantics<arbitrary>], iteration_bounds = array<i64: 1>, scalar_prefetch = 0 : i64, scratch_operands = 0 : i64, tpu.core_type = #tpu.core_type<tc>, window_params = [{transform_indices = @transform_0, window_bounds = array<i64: 8, 128>}, {pipeline_mode = #tpu.pipeline_mode<synchronous>, transform_indices = @transform_1, window_bounds = array<i64: 128, 256>}, {pipeline_mode = #tpu.pipeline_mode<synchronous>, transform_indices = @transform_2, window_bounds = array<i64: 1, 256>}, {pipeline_mode = #tpu.pipeline_mode<synchronous>, transform_indices = @transform_3, window_bounds = array<i64: 1, 256>}, {pipeline_mode = #tpu.pipeline_mode<synchronous>, transform_indices = @transform_4, window_bounds = array<i64: 1, 1>}]} {
    %c0_i32 = arith.constant 0 : i32
    %0 = arith.cmpi eq, %arg0, %c0_i32 : i32
    %1 = arith.extui %0 : i1 to i32
    %c0_i32_0 = arith.constant 0 : i32
    %2 = arith.cmpi ne, %1, %c0_i32_0 : i32
    scf.if %2 {
      %cst_15 = arith.constant 0.000000e+00 : f32
      %23 = vector.broadcast %cst_15 : f32 to vector<1x1xf32>
      %c0_16 = arith.constant 0 : index
      %c0_17 = arith.constant 0 : index
      %24 = vector.load %arg5[%c0_16, %c0_17] : memref<1x1xf32, #tpu.memory_space<vmem>>, vector<1x1xf32>
      tpu.vector_store %arg5[%c0_16, %c0_17], %23 {strides = array<i32>} : memref<1x1xf32, #tpu.memory_space<vmem>>, vector<1x1xf32>,
    } else {
    }
    %c0 = arith.constant 0 : index
    %c0_1 = arith.constant 0 : index
    %3 = vector.load %arg1[%c0, %c0_1] : memref<8x128xbf16, #tpu.memory_space<vmem>>, vector<8x128xbf16>
    %c0_2 = arith.constant 0 : index
    %c0_3 = arith.constant 0 : index
    %4 = vector.load %arg2[%c0_2, %c0_3] : memref<128x256xbf16, #tpu.memory_space<vmem>>, vector<128x256xbf16>
    %cst = arith.constant dense<0.000000e+00> : vector<8x256xf32>
    %5 = tpu.matmul %3, %4, %cst {dimension_numbers = #tpu.dot_dimension_numbers<[1], [0], [0], [1], [0, 0, 1, 1], [], []>} : vector<8x128xbf16>, vector<128x256xbf16>, vector<8x256xf32> -> vector<8x256xf32>
    %c0_4 = arith.constant 0 : index
    %c0_5 = arith.constant 0 : index
    %6 = vector.load %arg3[%c0_4, %c0_5] : memref<1x256xf32, #tpu.memory_space<vmem>>, vector<1x256xf32>
    %7 = vector.broadcast %6 : vector<1x256xf32> to vector<8x256xf32>
    %8 = arith.addf %5, %7 : vector<8x256xf32>
    %cst_6 = arith.constant 0.000000e+00 : f32
    %9 = vector.broadcast %cst_6 : f32 to vector<8x256xf32>
    %10 = arith.maximumf %8, %9 : vector<8x256xf32>
    %c0_7 = arith.constant 0 : index
    %c0_8 = arith.constant 0 : index
    %11 = vector.load %arg5[%c0_7, %c0_8] : memref<1x1xf32, #tpu.memory_space<vmem>>, vector<1x1xf32>
    %c0_9 = arith.constant 0 : index
    %c0_10 = arith.constant 0 : index
    %12 = vector.load %arg4[%c0_9, %c0_10] : memref<1x256xf32, #tpu.memory_space<vmem>>, vector<1x256xf32>
    %13 = vector.broadcast %12 : vector<1x256xf32> to vector<8x256xf32>
    %14 = arith.mulf %10, %13 : vector<8x256xf32>
    %15 = vector.shape_cast %14 : vector<8x256xf32> to vector<1x8x256xf32>
    %cst_11 = arith.constant dense<0.000000e+00> : vector<1xf32>
    %16 = vector.multi_reduction <add>, %15, %cst_11 [1, 2] : vector<1x8x256xf32> to vector<1xf32>
    %17 = vector.shape_cast %16 : vector<1xf32> to vector<1x1x1xf32>
    %18 = vector.extract %17[0, 0, 0] : f32 from vector<1x1x1xf32>
    %cst_12 = arith.constant 9.765625E-4 : f32
    %19 = arith.mulf %18, %cst_12 : f32
    %20 = vector.broadcast %19 : f32 to vector<1x1xf32>
    %21 = arith.addf %11, %20 : vector<1x1xf32>
    %c0_13 = arith.constant 0 : index
    %c0_14 = arith.constant 0 : index
    %22 = vector.load %arg5[%c0_13, %c0_14] : memref<1x1xf32, #tpu.memory_space<vmem>>, vector<1x1xf32>
    tpu.vector_store %arg5[%c0_13, %c0_14], %21 {strides = array<i32>} : memref<1x1xf32, #tpu.memory_space<vmem>>, vector<1x1xf32>,
    return
  }
  func.func @transform_0(%arg0: i32) -> (i32, i32) {
    %c0_i32 = arith.constant 0 : i32
    %c0_i32_0 = arith.constant 0 : i32
    return %arg0, %c0_i32 : i32, i32
  }
  func.func @transform_1(%arg0: i32) -> (i32, i32) {
    %c0_i32 = arith.constant 0 : i32
    %c0_i32_0 = arith.constant 0 : i32
    %c0_i32_1 = arith.constant 0 : i32
    return %c0_i32, %c0_i32_0 : i32, i32
  }
  func.func @transform_2(%arg0: i32) -> (i32, i32) {
    %c0_i32 = arith.constant 0 : i32
    %c0_i32_0 = arith.constant 0 : i32
    %c0_i32_1 = arith.constant 0 : i32
    return %c0_i32, %c0_i32_0 : i32, i32
  }
  func.func @transform_3(%arg0: i32) -> (i32, i32) {
    %c0_i32 = arith.constant 0 : i32
    %c0_i32_0 = arith.constant 0 : i32
    %c0_i32_1 = arith.constant 0 : i32
    return %c0_i32, %c0_i32_0 : i32, i32
  }
  func.func @transform_4(%arg0: i32) -> (i32, i32) {
    %c0_i32 = arith.constant 0 : i32
    %c0_i32_0 = arith.constant 0 : i32
    %c0_i32_1 = arith.constant 0 : i32
    return %c0_i32, %c0_i32_0 : i32, i32
  }
}

</mosaic_0001>

<bundles_post_ra>
// kernel: top_forward.1
= control target key start
LH: loop header
LB: loop body
LE: loop exit
PB: predicated region body
PF: predicated region fallthrough
CT: control target
= control target key end

     0   :  { %v290_v2 = vmov 0   ;;  %s389_s0 = inlined_call_operand.vmem [shape: bf16[8,128], index: 0, kind: input, shape index: {}]   ;;  %s390_s1 = inlined_call_operand.vmem [shape: bf16[128,256], index: 1, kind: input, shape index: {}]   ;;  %s391_s2 = inlined_call_operand.vmem [shape: f32[1,256], index: 2, kind: input, shape index: {}]   ;;  %s392_s3 = inlined_call_operand.vmem [shape: f32[1,256], index: 3, kind: input, shape index: {}]   ;;  %s393_s4 = inlined_call_operand.hbm [shape: f32[1,1], index: 4, kind: output, shape index: {}]  }
   0x1   :  { %v242_v0 = vld [vmem:[%s390_s1 + $0x4] ss:$8 sps:$4 sm:$0xff]   ;;  %v244_v1 = vld [vmem:[%s390_s1] ss:$8 sps:$4 sm:$0xff]   ;;  %166 = vmatprep.mubr.bf16.mxu0 %v290_v2  ;;  %v245_v3 = vld [vmem:[%s390_s1 + $0x14] ss:$8 sps:$4 sm:$0xff]  }
   0x2   :  { %134 = vmatprep.subr.bf16.mxu0 %v242_v0  ;;  %v247_v4 = vld [vmem:[%s390_s1 + $0x10] ss:$8 sps:$4 sm:$0xff]   ;;  %v248_v5 = vld [vmem:[%s390_s1 + $0x24] ss:$8 sps:$4 sm:$0xff]   ;;  %v250_v6 = vld [vmem:[%s390_s1 + $0x20] ss:$8 sps:$4 sm:$0xff]  }
   0x3   :  { %135 = vmatpush1.bf16.msra.mxu0 %v244_v1  ;;  %v251_v7 = vld [vmem:[%s390_s1 + $0x34] ss:$8 sps:$4 sm:$0xff]   ;;  %v253_v8 = vld [vmem:[%s390_s1 + $0x30] ss:$8 sps:$4 sm:$0xff]  }
   0x4   :  { %136 = vmatprep.subr.bf16.mxu0 %v245_v3 }
   0x7   :  { %137 = vmatpush1.bf16.msra.mxu0 %v247_v4 }
   0x8   :  { %138 = vmatprep.subr.bf16.mxu0 %v248_v5 }
   0xb   :  { %139 = vmatpush1.bf16.msra.mxu0 %v250_v6 }
   0xc   :  { %9 = vsyncpa [#allocation3], 0  ;;  %140 = vmatprep.subr.bf16.mxu0 %v251_v7  ;;  %v254_v9 = vld [vmem:[%s390_s1 + $0x44] ss:$8 sps:$4 sm:$0xff]   ;;  %v256_v10 = vld [vmem:[%s390_s1 + $0x40] ss:$8 sps:$4 sm:$0xff]   ;;  %v44_v18 = vlaneseq }
   0xd   :  { %v257_v11 = vld [vmem:[%s390_s1 + $0x54] ss:$8 sps:$4 sm:$0xff]   ;;  %v259_v12 = vld [vmem:[%s390_s1 + $0x50] ss:$8 sps:$4 sm:$0xff]   ;;  %v260_v13 = vld [vmem:[%s390_s1 + $0x64] ss:$8 sps:$4 sm:$0xff]  }
   0xe   :  { %v262_v14 = vld [vmem:[%s390_s1 + $0x60] ss:$8 sps:$4 sm:$0xff]   ;;  %v263_v15 = vld [vmem:[%s390_s1 + $0x74] ss:$8 sps:$4 sm:$0xff]   ;;  %v265_v16 = vld [vmem:[%s390_s1 + $0x70] ss:$8 sps:$4 sm:$0xff]  }
   0xf   :  { %141 = vmatpush1.bf16.msra.mxu0 %v253_v8  ;;  %v25_v17 = vld [vmem:[%s389_s0] sm:$0xf]  ;;  %v45_v19 = vshrl.u32 %v44_v18, 7  ;;  %vm23_vm0 = vcmask 0   ;;  %v291_v39 = vmov 0.0  }
  0x10   :  { %142 = vmatprep.subr.bf16.mxu0 %v254_v9  ;;  %v42_v21 = vld [vmem:[%s391_s2] sm:$0x3]  ;;  %24 = vst.msk [vmem:[#allocation2] sm:$0x1] %vm23_vm0, %v291_v39  ;;  %s292_s2 = smov [#allocation2]  }
  0x11   :  { %v46_v20 = vsub.s32 0, %v45_v19  ;;  %v50_v22 = vsub.s32 1, %v45_v19  ;;  %v178_v25 = vld [vmem:[%s392_s3] sm:$0x3]  ;;  %s213_s3 = sshll.u32 %s292_s2, 4  ;;  %s214_s3 = int_to_ptr.vmem [resolvable:$true] %s213_s3 }
  0x12   :  { %s266_s27 = scalar_lea.vmem %s214_s3, 16  ;;  %s270_s28 = scalar_lea.vmem %s214_s3, 32 }
  0x13   :  { %143 = vmatpush1.bf16.msra.mxu0 %v256_v10  ;;  %v47_v23 = vrot.slane %v42_v21, %v46_v20  ;;  %v51_v24 = vrot.slane %v42_v21, %v50_v22  ;;  %v183_v29 = vrot.slane %v178_v25, %v46_v20  ;;  %v187_v32 = vrot.slane %v178_v25, %v50_v22  ;;  %p267_p0 = scmp.ne.s32.totalorder %s214_s3, %s266_s27  ;;  %p271_p1 = scmp.lt.s32.totalorder %s214_s3, %s214_s3 }
  0x14   :  { %144 = vmatprep.subr.bf16.mxu0 %v257_v11  ;;  %p272_p2 = scmp.lt.s32.totalorder %s270_s28, %s266_s27 }
  0x16   :  { %p273_p3 = por %p272_p2, %p271_p1 }
  0x17   :  { %145 = vmatpush1.bf16.msra.mxu0 %v259_v12  ;;  %v177_v47 = vld [vmem:[#allocation2] sm:$0x1] }
  0x18   :  { %146 = vmatprep.subr.bf16.mxu0 %v260_v13  ;;  %p274_p4 = pnand %p273_p3, %p267_p0 }
  0x1b   :  { %147 = vmatpush1.bf16.msra.mxu0 %v262_v14 }
  0x1c   :  { %148 = vmatprep.subr.bf16.mxu0 %v263_v15 }
  0x1f   :  { %149 = vmatpush1.bf16.msra.mxu0 %v265_v16 }
  0x22   :  { %167 = vmatmul.mubr.bf16.vlgmr.msra.gmra.mrb[0].mxu0 %v25_v17 }
  0xf5   :  { %v168_v26 = vpop.f32.mrb[0].mxu0 }
  0xf6   :  { %v169_v27 = vadd.f32 %v168_v26, %v47_v23  ;;  %v170_v28 = vpop.f32.mrb[1].mxu0 }
  0xf7   :  { %v171_v30 = vadd.f32 %v170_v28, %v51_v24  ;;  %v172_v31 = vpop.f32.mrb[2].mxu0 }
  0xf8   :  { %v175_v33 = vmax.f32 %v169_v27, 0.0  ;;  %v173_v34 = vpop.f32.mrb[3].mxu0 }
  0xf9   :  { %v176_v35 = vmax.f32 %v171_v30, 0.0 }
  0xfa   :  { %v190_v36 = vmul.f32 %v183_v29, %v175_v33 }
  0xfb   :  { %v191_v37 = vmul.f32 %v187_v32, %v176_v35 }
  0xfd   :  { %v192_v38 = vadd.f32 %v191_v37, %v190_v36 }
  0xff   :  { %193 = vadd.xlane.f32.xlu0 %v192_v38 }
 0x18c   :  { %v194_v40 = vpop.xlane.xlu0 %193 }
 0x18d   :  { %v195_v41 = vrot.slane %v194_v40, 4 }
 0x18f   :  { %v196_v42 = vadd.f32 %v195_v41, %v194_v40 }
 0x191   :  { %v197_v43 = vrot.slane %v196_v42, 2 }
 0x193   :  { %v198_v44 = vadd.f32 %v197_v43, %v196_v42 }
 0x195   :  { %v199_v45 = vrot.slane %v198_v44, 1 }
 0x197   :  { %v200_v46 = vadd.f32 %v199_v45, %v198_v44 }
 0x199   :  { %237 = vpush %v200_v46 }
 0x1ca   :  { %s238_s0 = spop %237 }
 0x1cb   :  { %s202_s1 = smul.f32 0.0009765625, %s238_s0 }
 0x1cd   :  { %v203_v48 = vstv %s202_s1 }
 0x1ce   :  { %v204_v49 = vadd.f32 %v203_v48, %v177_v47 }
 0x1d0   :  { %206 = vst.msk [vmem:[#allocation2] sm:$0x1] %vm23_vm0, %v204_v49 }
 0x1d1   :  { %277 = shalt.err (!%p274_p4)
}
 0x1d2   :  { %s278_s5 = scalar_lea.hbm %s393_s4, 16 }
 0x1d3   :  { %p279_p5 = scmp.ne.s32.totalorder %s393_s4, %s278_s5  ;;  %p282_p6 = scmp.lt.u32.totalorder %s278_s5, %s393_s4 }
 0x1d5   :  { %p284_p7 = pnand %p282_p6, %p279_p5 }
 0x1d7   :  { %287 = shalt.err (!%p284_p7)
}
 0x1d8   :  { %216 = dma.vmem_to_hbm [thread:$0]  %s214_s3, 16, %s393_s4, [#allocation3]  }
 0x1d9   :  { %288 = dma.done.wait [#allocation3], 16  }
 0x1da   :  { %289 = vsyncadd [#allocation3], 4294967280 }
 0x1db   :  { %220 = vsyncpa [#allocation3], 1 }

</bundles_post_ra>
